<compile_context>
chip_gen: v6e
topology: v6e:2x2x1
jax: 0.10.0
libtpu: 0.0.40
codegen_flags: <defaults>
</compile_context>

<pallas_src>
import math

import jax
import jax.numpy as jnp
from jax.experimental import pallas as pl
from jax.experimental.pallas import tpu as pltpu


_VMEM_LIMIT_BYTES = 64 * 1024 * 1024   # <= physical VMEM on v5e/v6e (128 MiB) and v7x (64 MiB)


def _round_up(v, m):
    return (v + m - 1) // m * m


# --------------------------------------------------------------------------------------
# Kernels
# --------------------------------------------------------------------------------------
def _mm_kernel(a_ref, w_ref, o_ref):
    """Flat matmul tile: (tm, K) @ (K, tn) -> (tm, tn), f32 accumulation on the MXU."""
    o_ref[...] = jnp.dot(a_ref[...], w_ref[...],
                         preferred_element_type=jnp.float32).astype(o_ref.dtype)


def _bmm_kernel(a_ref, w_ref, o_ref):
    """Per-batch matmul: (L, K) @ (K, N) -> (L, N) for one batch element per grid step."""
    o_ref[0] = jnp.dot(a_ref[0], w_ref[0],
                       preferred_element_type=jnp.float32).astype(o_ref.dtype)


# --------------------------------------------------------------------------------------
# Pallas wrappers
# --------------------------------------------------------------------------------------
def _choose_tile_m(m):
    """Largest M tile (<=512, multiple of 8) that still gives >=2 grid steps."""
    m8 = _round_up(max(m, 8), 8)
    for t in (512, 256, 128, 64, 32, 16, 8):
        if m8 >= 2 * t:
            return t
    return m8


def _choose_tile_n(n):
    if n <= 1024:
        return n
    for t in (1024, 512, 256, 128):
        if n % t == 0:
            return t
    return n


def _flat_matmul(a, w):
    """a: (M, K) @ w: (K, N); K, N multiples of 128.

    The shared weight `w` has a constant block index along the M grid axis, so it is held
    resident in VMEM instead of being re-DMA'd per step (dynamic-mode shared K / K_step).
    """
    M, K = a.shape
    Kw, N = w.shape
    assert K == Kw
    tm = _choose_tile_m(M)
    Mp = _round_up(M, tm)
    if Mp != M:
        a = jnp.pad(a, ((0, Mp - M), (0, 0)))
    tn = _choose_tile_n(N)
    grid = (Mp // tm, N // tn)
    itemsize = a.dtype.itemsize
    cost = pl.CostEstimate(flops=2 * Mp * K * N, transcendentals=0,
                           bytes_accessed=itemsize * (Mp * K + K * N + Mp * N))
    out = pl.pallas_call(
        _mm_kernel,
        out_shape=jax.ShapeDtypeStruct((Mp, N), a.dtype),
        grid=grid,
        in_specs=[pl.BlockSpec((tm, K), lambda i, j: (i, 0)),
                  pl.BlockSpec((K, tn), lambda i, j: (0, j))],   # shared weight, resident
        out_specs=pl.BlockSpec((tm, tn), lambda i, j: (i, j)),
        compiler_params=pltpu.CompilerParams(
            dimension_semantics=("parallel", "parallel"),
            vmem_limit_bytes=_VMEM_LIMIT_BYTES),
        cost_estimate=cost,
    )(a, w)
    return out[:M] if Mp != M else out


def _batched_matmul(a, w):
    """a: (B, L, K) @ w: (B, K, N) with per-batch weights (static / hybrid modes)."""
    B, L, K = a.shape
    _, _, N = w.shape
    itemsize = a.dtype.itemsize
    cost = pl.CostEstimate(flops=2 * B * L * K * N, transcendentals=0,
                           bytes_accessed=itemsize * B * (L * K + K * N + L * N))
    return pl.pallas_call(
        _bmm_kernel,
        out_shape=jax.ShapeDtypeStruct((B, L, N), a.dtype),
        grid=(B,),
        in_specs=[pl.BlockSpec((1, L, K), lambda b: (b, 0, 0)),
                  pl.BlockSpec((1, K, N), lambda b: (b, 0, 0))],
        out_specs=pl.BlockSpec((1, L, N), lambda b: (b, 0, 0)),
        compiler_params=pltpu.CompilerParams(
            dimension_semantics=("parallel",),
            vmem_limit_bytes=_VMEM_LIMIT_BYTES),
        cost_estimate=cost,
    )(a, w)


# --------------------------------------------------------------------------------------
# Helpers
# --------------------------------------------------------------------------------------
def _matrix_power(K, power):
    """matrix_power via binary exponentiation (works batched), full-f32 matmuls."""
    assert power >= 1
    hi = jax.lax.Precision.HIGHEST
    result, base, p = None, K, power
    while p > 0:
        if p & 1:
            result = base if result is None else jnp.matmul(result, base, precision=hi)
        p >>= 1
        if p:
            base = jnp.matmul(base, base, precision=hi)
    return result


# --------------------------------------------------------------------------------------
# Forward
# --------------------------------------------------------------------------------------
def kp_layer_approx_forward(z, K_dynamic=None, *, mode="dynamic", pred_len=1):
    """JAX/Pallas forward of KPLayerApprox.  z: (B, input_len, E) -> (z_rec, z_pred)."""
    B, L, E = z.shape
    assert L > 1, "snapshots number should be larger than 1"
    assert pred_len >= 1
    if mode != "static":
        assert K_dynamic is not None
    dtype = z.dtype
    hi = jax.lax.Precision.HIGHEST

    x, y = z[:, :-1], z[:, 1:]
    eye = jnp.eye(E, dtype=dtype)
    power = pred_len if pred_len <= L else L
    n_chunks = math.ceil(pred_len / L)

    # Lane-dense padding of the feature axis (exact: padded rows/cols are zero).
    Ep = _round_up(E, 128)
    pe = Ep - E
    z_pad = jnp.pad(z, ((0, 0), (0, 0), (0, pe)))

    if mode == "dynamic":
        # -------- shared-K fast path: dedupe K / K_step, flatten batch into M ----------
        K = K_dynamic.astype(dtype)
        K = jnp.where(jnp.any(jnp.isnan(K)), eye, K)
        K_step = _matrix_power(K, power)
        K_step = jnp.where(jnp.any(jnp.isnan(K_step)), eye, K_step)

        K_pad = jnp.pad(K, ((0, pe), (0, pe)))
        Ks_pad = jnp.pad(K_step, ((0, pe), (0, pe)))
        z_flat = z_pad.reshape(B * L, Ep)

        # rec: compute all L rows per batch (dense), discard the last row in the wrapper.
        rec_flat = _flat_matmul(z_flat, K_pad)                       # (B*L, Ep)
        rec_tail = rec_flat.reshape(B, L, Ep)[:, :L - 1, :E]

        if pred_len <= L:
            ztail_flat = z_pad[:, L - pred_len:, :].reshape(B * pred_len, Ep)
            pred_flat = _flat_matmul(ztail_flat, Ks_pad)             # (B*pred_len, Ep)
            z_pred = pred_flat.reshape(B, pred_len, Ep)[:, :, :E]
        else:
            # Stack Ks, Ks^2, ..., Ks^n along N (batch-independent), one big matmul.
            powers = [Ks_pad]
            for _ in range(n_chunks - 1):
                powers.append(jnp.matmul(powers[-1], Ks_pad, precision=hi))
            W_stack = jnp.concatenate(powers, axis=1)                # (Ep, n*Ep)
            pred_flat = _flat_matmul(z_flat, W_stack)                # (B*L, n*Ep)
            pred = pred_flat.reshape(B, L, n_chunks, Ep)[..., :E]    # (B, L, n, E)
            z_pred = jnp.transpose(pred, (0, 2, 1, 3)).reshape(B, n_chunks * L, E)
            z_pred = z_pred[:, :pred_len]
    else:
        # -------- per-batch K (static / hybrid): batched lane-dense matmuls ------------
        # TODO(synk): torch.linalg.lstsq has no Pallas equivalent; min-norm LS via pinv (XLA SVD).
        K = jnp.matmul(jnp.linalg.pinv(x), y, precision=hi)
        if mode != "static":
            K = K + K_dynamic.astype(dtype)[None]
        K = jnp.where(jnp.any(jnp.isnan(K)), eye[None], K)
        K_step = _matrix_power(K, power)
        K_step = jnp.where(jnp.any(jnp.isnan(K_step)), eye[None], K_step)

        K_pad = jnp.pad(K, ((0, 0), (0, pe), (0, pe)))
        Ks_pad = jnp.pad(K_step, ((0, 0), (0, pe), (0, pe)))

        if pred_len <= L:
            # Pack [K | K_step] along N: one full-height matmul per batch element.
            W = jnp.concatenate([K_pad, Ks_pad], axis=2)             # (B, Ep, 2*Ep)
            out = _batched_matmul(z_pad, W)                          # (B, L, 2*Ep)
            rec_tail = out[:, :L - 1, :E]
            z_pred = out[:, L - pred_len:, Ep:Ep + E]
        else:
            powers = [Ks_pad]
            for _ in range(n_chunks - 1):
                powers.append(jnp.matmul(powers[-1], Ks_pad, precision=hi))
            W = jnp.concatenate([K_pad] + powers, axis=2)            # (B, Ep, (n+1)*Ep)
            out = _batched_matmul(z_pad, W)                          # (B, L, (n+1)*Ep)
            rec_tail = out[:, :L - 1, :E]
            pred = out.reshape(B, L, n_chunks + 1, Ep)[:, :, 1:, :E]
            z_pred = jnp.transpose(pred, (0, 2, 1, 3)).reshape(B, n_chunks * L, E)
            z_pred = z_pred[:, :pred_len]

    z_rec = jnp.concatenate([z[:, :1], rec_tail], axis=1)
    return z_rec, z_pred


# --------------------------------------------------------------------------------------
# Pure-JAX reference (mirrors the PyTorch module) for correctness checking
# --------------------------------------------------------------------------------------
def kp_layer_approx_reference(z, K_dynamic, mode, pred_len):
    hi = jax.lax.Precision.HIGHEST
    B, L, E = z.shape
    dtype = z.dtype
    x, y = z[:, :-1], z[:, 1:]
    if mode == "static":
        K = jnp.matmul(jnp.linalg.pinv(x), y, precision=hi)
    elif mode == "dynamic":
        K = jnp.broadcast_to(K_dynamic.astype(dtype)[None], (B, E, E))
    else:
        K = jnp.matmul(jnp.linalg.pinv(x), y, precision=hi) + K_dynamic.astype(dtype)[None]
    eye = jnp.eye(E, dtype=dtype)
    K = jnp.where(jnp.any(jnp.isnan(K)), eye[None], K)
    z_rec = jnp.concatenate([z[:, :1], jnp.matmul(x, K, precision=hi)], axis=1)
    power = pred_len if pred_len <= L else L
    K_step = _matrix_power(K, power)
    K_step = jnp.where(jnp.any(jnp.isnan(K_step)), eye[None], K_step)
    if pred_len <= L:
        z_pred = jnp.matmul(z[:, -pred_len:], K_step, precision=hi)
    else:
        cur, preds = z, []
        for _ in range(math.ceil(pred_len / L)):
            cur = jnp.matmul(cur, K_step, precision=hi)
            preds.append(cur)
        z_pred = jnp.concatenate(preds, axis=1)[:, :pred_len]
    return z_rec, z_pred


if __name__ == "__main__":
    # Full-f32 matmuls everywhere so the jnp reference matches the f32 MXU accumulation.
    jax.config.update("jax_default_matmul_precision", "highest")

    # Small shapes consistent with the module: z is (batch, input_len, dynamic_dim).
    B, input_len, E = 2, 8, 16
    key = jax.random.PRNGKey(0)
    kz, kk = jax.random.split(key)
    z = jax.random.normal(kz, (B, input_len, E), dtype=jnp.float32)

    # K_dynamic init mirrors the module: orthogonal factor of a random matrix (U @ V^T).
    K_init = jax.random.normal(kk, (E, E), dtype=jnp.float32)
    U, _, Vh = jnp.linalg.svd(K_init)
    K_dynamic = U @ Vh

    # Path 1: dynamic mode, pred_len <= input_len (flattened-batch matmuls, shared K).
    pred_len_a = 4
    z_rec, z_pred = kp_layer_approx_forward(z, K_dynamic, mode="dynamic", pred_len=pred_len_a)
    z_rec, z_pred = jax.block_until_ready((z_rec, z_pred))
    r_rec, r_pred = kp_layer_approx_reference(z, K_dynamic, "dynamic", pred_len_a)
    assert z_rec.shape == (B, input_len, E) and z_pred.shape == (B, pred_len_a, E)
    assert jnp.allclose(z_rec, r_rec, atol=1e-4, rtol=1e-4), "z_rec mismatch (dyn, pred<=L)"
    assert jnp.allclose(z_pred, r_pred, atol=1e-4, rtol=1e-4), "z_pred mismatch (dyn, pred<=L)"

    # Path 2: dynamic mode, pred_len > input_len (stacked-powers rollout in one matmul).
    pred_len_b = 20
    z_rec2, z_pred2 = kp_layer_approx_forward(z, K_dynamic, mode="dynamic", pred_len=pred_len_b)
    z_rec2, z_pred2 = jax.block_until_ready((z_rec2, z_pred2))
    r_rec2, r_pred2 = kp_layer_approx_reference(z, K_dynamic, "dynamic", pred_len_b)
    assert z_pred2.shape == (B, pred_len_b, E)
    assert jnp.allclose(z_rec2, r_rec2, atol=1e-4, rtol=1e-4), "z_rec mismatch (dyn, pred>L)"
    assert jnp.allclose(z_pred2, r_pred2, atol=1e-4, rtol=1e-4), "z_pred mismatch (dyn, pred>L)"

    # Path 3: hybrid mode (per-batch K via pinv) exercises the batched-K Pallas kernel.
    z_rec3, z_pred3 = kp_layer_approx_forward(z, K_dynamic, mode="hybrid", pred_len=pred_len_a)
    z_rec3, z_pred3 = jax.block_until_ready((z_rec3, z_pred3))
    r_rec3, r_pred3 = kp_layer_approx_reference(z, K_dynamic, "hybrid", pred_len_a)
    assert jnp.allclose(z_rec3, r_rec3, atol=1e-4, rtol=1e-4), "z_rec mismatch (hybrid)"
    assert jnp.allclose(z_pred3, r_pred3, atol=1e-4, rtol=1e-4), "z_pred mismatch (hybrid)"

    print("KERNEL_OK")
</pallas_src>

<mosaic_0001>
module attributes {stable_mosaic.version = 11 : i64} {
  func.func @_mm_kernel(%arg0: i32, %arg1: i32, %arg2: memref<8x128xf32, #tpu.memory_space<vmem>>, %arg3: memref<128x128xf32, #tpu.memory_space<vmem>>, %arg4: memref<8x128xf32, #tpu.memory_space<vmem>>) attributes {dimension_semantics = [#tpu.dimension_semantics<parallel>, #tpu.dimension_semantics<parallel>], iteration_bounds = array<i64: 2, 1>, scalar_prefetch = 0 : i64, scratch_operands = 0 : i64, tpu.core_type = #tpu.core_type<tc>, window_params = [{transform_indices = @transform_0, window_bounds = array<i64: 8, 128>}, {transform_indices = @transform_1, window_bounds = array<i64: 128, 128>}, {transform_indices = @transform_2, window_bounds = array<i64: 8, 128>}]} {
    %c0 = arith.constant 0 : index
    %c0_0 = arith.constant 0 : index
    %0 = vector.load %arg2[%c0, %c0_0] : memref<8x128xf32, #tpu.memory_space<vmem>>, vector<8x128xf32>
    %c0_1 = arith.constant 0 : index
    %c0_2 = arith.constant 0 : index
    %1 = vector.load %arg3[%c0_1, %c0_2] : memref<128x128xf32, #tpu.memory_space<vmem>>, vector<128x128xf32>
    %cst = arith.constant dense<0.000000e+00> : vector<8x128xf32>
    %2 = tpu.matmul %0, %1, %cst {dimension_numbers = #tpu.dot_dimension_numbers<[1], [0], [0], [1], [0, 0, 1, 1], [], []>, precision = #tpu.contract_precision<fp32>} : vector<8x128xf32>, vector<128x128xf32>, vector<8x128xf32> -> vector<8x128xf32>
    %c0_3 = arith.constant 0 : index
    %c0_4 = arith.constant 0 : index
    %3 = vector.load %arg4[%c0_3, %c0_4] : memref<8x128xf32, #tpu.memory_space<vmem>>, vector<8x128xf32>
    tpu.vector_store %arg4[%c0_3, %c0_4], %2 {strides = array<i32>} : memref<8x128xf32, #tpu.memory_space<vmem>>, vector<8x128xf32>,
    return
  }
  func.func @transform_0(%arg0: i32, %arg1: i32) -> (i32, i32) {
    %c0_i32 = arith.constant 0 : i32
    %c0_i32_0 = arith.constant 0 : i32
    return %arg0, %c0_i32 : i32, i32
  }
  func.func @transform_1(%arg0: i32, %arg1: i32) -> (i32, i32) {
    %c0_i32 = arith.constant 0 : i32
    %c0_i32_0 = arith.constant 0 : i32
    return %c0_i32, %arg1 : i32, i32
  }
  func.func @transform_2(%arg0: i32, %arg1: i32) -> (i32, i32) {
    %c0_i32 = arith.constant 0 : i32
    return %arg0, %arg1 : i32, i32
  }
}

</mosaic_0001>

<bundles_post_ra>
// kernel: tpu_custom_call.1
= control target key start
LH: loop header
LB: loop body
LE: loop exit
PB: predicated region body
PF: predicated region fallthrough
CT: control target
= control target key end

     0   :  { %7 = vsyncpa [#allocation3], 0  ;;  %s2069_s0 = inlined_call_operand.hbm [shape: f32[16,128], index: 0, kind: input, shape index: {}]   ;;  %s2070_s1 = inlined_call_operand.hbm [shape: f32[128,128], index: 1, kind: input, shape index: {}]   ;;  %s2071_s2 = inlined_call_operand.hbm [shape: f32[16,128], index: 2, kind: output, shape index: {}]  }
   0x1   :  { %9 = vsyncpa [#allocation3 + $0x1], 0 }
   0x2   :  { %10 = vsyncpa [#allocation6], 0 }
   0x3   :  { %11 = vsyncpa [#allocation4], 0 }
   0x4   :  { %13 = vsyncpa [#allocation4 + $0x1], 0  ;;  %s1526_s9 = smov 0   ;;  %s1528_s10 = smov 0  }
   0x5   :  { %s1530_s11 = smov 0   ;;  %s1532_s12 = smov 0  }
   0x6   :  { %s1534_s13 = smov 0   ;;  %s1536_s14 = smov 0  }
   0x7 LB: > { %s960_s15 = sadd.s32 4294967295, %s1502_s14   ;;  %s961_s16 = sadd.s32 4294967294, %s1502_s14   ;;  %s1502_s14 = sphi %s1536_s14, %s19_s14   ;;  %s1498_s13 = sphi %s1534_s13, %s2089_s13   ;;  %s1494_s12 = sphi %s1532_s12, %s2088_s12   ;;  %s1490_s11 = sphi %s1530_s11, %s2087_s11   ;;  %s1486_s10 = sphi %s1528_s10, %s2086_s10   ;;  %s1482_s9 = sphi %s1526_s9, %s2085_s9  }
   0x8   : > { %p51_p0 = scmp.ne.s32.totalorder %s1486_s10, %s1482_s9  ;;  %p1560_p1 = scmp.eq.s32.totalorder %s960_s15, 0 }
   0x9   : > { %p1564_p2 = scmp.eq.s32.totalorder %s960_s15, 1  ;;  %p109_p3 = scmp.eq.s32.totalorder %s961_s16, 1 }
   0xa   : > { %p1570_p4 = por %p1560_p1, %p51_p0  ;;  %p962_p5 = scmp.ge.s32.totalorder %s1502_s14, 1 }
   0xb   : > { %p1575_p6 = por %p109_p3, %p51_p0  ;;  %p116_p7 = scmp.lt.s32.totalorder %s1502_s14, 3 }
   0xc   : > { %s2075_s19 = scalar_select %p1570_p4, 1, 0 }
   0xd   : > { %s2076_s20 = scalar_select %p1575_p6, 1, 0 }
   0xe   : > { %p1580_p8 = pnand %p962_p5, %p116_p7  ;;  %s1504_s22 = smov [#allocation5]  }
   0xf   : > { %s130_s23 = sshll.u32 %s1504_s22, 4  ;;  %s31_s25 = sadd.s32 1, %s1498_s13  ;;  %s131_s23 = int_to_ptr.vmem [resolvable:$true] %s130_s23 }
  0x10   : > { %p1295_p9 = pneg %p1580_p8  ;;  %s1375_s26 = scalar_lea.vmem %s131_s23, 2048 }
  0x11   : > { %p1376_p13 = scmp.ne.s32.totalorder %s131_s23, %s1375_s26  ;;  %p1383_p5 = scmp.lt.s32.totalorder %s131_s23, %s131_s23 }
  0x12   : > { %p1589_p11 = pnand %p1295_p9, %p1560_p1  ;;  %p1384_p7 = scmp.lt.s32.totalorder %s1375_s26, %s1375_s26 }
  0x14   : > { %p1366_p12 = pneg %p1589_p11  ;;  %p1385_p6 = por %p1384_p7, %p1383_p5 }
  0x16   : > { %p1378_p0 = pnand %p1376_p13, %p1366_p12 }
  0x18   : > { %p1379_p3 = pneg %p1378_p0 }
  0x1a   : > { %p1386_p4 = pnand %p1385_p6, %p1379_p3 }
  0x1c   : > { %1389 = shalt.err (!%p1386_p4)
}
  0x1d   : > { %s1505_s27 = smov 128   ;;  %s1506_s28 = smov 8  }
  0x1e   : > { %1298 = dma.hbm_to_vmem [thread:$0]  (!%p1589_p11), %s2070_s1, 2048, %s131_s23, [#allocation6], %s1505_s27, %s1505_s27, %s1506_s28  }
  0x1f   : > { %p33_p6 = scmp.ge.s32.totalorder %s31_s25, 2  ;;  %s38_s3 = sadd.s32 1, %s1490_s11 }
  0x20   : > { %p45_p4 = scmp.ne.s32.totalorder %s1490_s11, %s1486_s10  ;;  %p46_p9 = scmp.eq.s32.totalorder %s1502_s14, 0 }
  0x21   : > { %s2091_s25 = smov (%p33_p6, %s31_s25), 0  ;;  %p1308_p0 = scmp.lt.s32.totalorder %s1502_s14, 2 }
  0x22   : > { %p1607_p12 = por %p46_p9, %p45_p4  ;;  %p1613_p13 = por %p1564_p2, %p45_p4 }
  0x23   : > { %s35_s6 = ssub.s32 %s1498_s13, %s2091_s25  ;;  %s144_s7 = sand.u32 1, %s1490_s11  }
  0x24   : > { %p36_p11 = scmp.eq.s32.totalorder %s35_s6, 0  ;;  %s965_s8 = sshll.u32 %s144_s7, 3 }
  0x25   : > { %s966_s16 = sshll.u32 %s1498_s13, 7  ;;  %s148_s26 = scalar_lea.vmem [#allocation2], %s965_s8 }
  0x26   : > { %s1622_s15 = scalar_select %p36_p11, %s1490_s11, %s38_s3  }
  0x27   : > { %s153_s24 = scalar_lea.hbm %s2069_s0, %s966_s16  ;;  %s155_s27 = sshll.u32 %s148_s26, 4  ;;  %s156_s27 = int_to_ptr.vmem [resolvable:$true] %s155_s27 }
  0x28   : > { %p1630_p2 = pnand %p1308_p0, %p1607_p12  ;;  %s145_s28 = scalar_lea.sflag [#allocation3], %s144_s7 }
  0x29   : > { %s1403_s29 = scalar_lea.vmem %s156_s27, 128  ;;  %s1507_s30 = smov [#allocation2]  }
  0x2a   : > { %p1392_p3 = pneg %p1630_p2  ;;  %p1404_p5 = scmp.ne.s32.totalorder %s156_s27, %s1403_s29 }
  0x2b   : > { %s1408_s3 = sshll.u32 %s1507_s30, 4  ;;  %s1409_s3 = int_to_ptr.vmem [resolvable:$false] %s1408_s3 }
  0x2c   : > { %p1406_p7 = pnand %p1404_p5, %p1392_p3  ;;  %s1410_s6 = scalar_lea.vmem %s1409_s3, 256 }
  0x2d   : > { %p1411_p4 = scmp.lt.s32.totalorder %s156_s27, %s1409_s3  ;;  %p1412_p9 = scmp.lt.s32.totalorder %s1410_s6, %s1403_s29 }
  0x2e   : > { %p1407_p6 = pneg %p1406_p7 }
  0x2f   : > { %p1413_p11 = por %p1412_p9, %p1411_p4 }
  0x31   : > { %p1414_p10 = pnand %p1413_p11, %p1407_p6 }
  0x33   : > { %1417 = shalt.err (!%p1414_p10)
}
  0x34   : > { %1302 = dma.hbm_to_vmem [thread:$0]  (!%p1630_p2), %s153_s24, 128, %s156_s27, %s145_s28  }
  0x35   : > { %164 = sbr.rel (%p1580_p8) target bundleno = 379 (0x17b), region = 28  ;;  %s1641_s4 = sand.u32 (!%p1580_p8), 1, %s1486_s10  }
  0x36   : > { %s968_s7 = sshll.u32 (!%p1580_p8), %s1641_s4, 3  ;;  %s167_s8 = scalar_lea.sflag (!%p1580_p8), [#allocation3], %s1641_s4 }
  0x37   : > { %s1647_s16 = scalar_lea.vmem (!%p1580_p8), [#allocation2], %s968_s7  ;;  %p2082_p12 = scmp.ne.s32.totalorder (!%p1580_p8), %s2075_s19, 0 }
  0x3a   : > { %1469 = dma.done.wait (%p2082_p12), %s167_s8, 128  }
  0x3b   : > { %1471 = vsyncadd (%p2082_p12), %s167_s8, 4294967168 }
  0x3c   : > { %1473 = dma.done.wait (%p1560_p1), [#allocation6], 2048  }
  0x3d   : > { %1475 = vsyncadd (%p1560_p1), [#allocation6], 4294965248  ;;  %v1508_v0 = vmov 0.0   ;;  %vm1509_vm0 = vmmov 0   ;;  %v211_v1 = vld [vmem:[#allocation5 + $0x78] sm:$0xff]  ;;  %v210_v2 = vld [vmem:[#allocation5 + $0x70] sm:$0xff] }
  0x3e   : > { %1077 = vmatprep.subr.mxu0 %v1508_v0  ;;  %1112 = vmatprep.subr.mxu1 %v1508_v0  ;;  %v209_v3 = vld [vmem:[#allocation5 + $0x68] sm:$0xff]  ;;  %v1663_v4 = vand.u32 4294901760, %v211_v1  ;;  %v1665_v5 = vand.u32 4294901760, %v210_v2  ;;  %v208_v7 = vld [vmem:[#allocation5 + $0x60] sm:$0xff]  ;;  %v207_v8 = vld [vmem:[#allocation5 + $0x58] sm:$0xff]  ;;  %s972_s17 = sshll.u32 %s1494_s12, 7 }
  0x3f   : > { %1109 = vmatprep.mubr.msk.f32.mxu0 %vm1509_vm0, %v1508_v0  ;;  %1144 = vmatprep.mubr.msk.f32.mxu1 %vm1509_vm0, %v1508_v0  ;;  %v1667_v6 = vand.u32 4294901760, %v209_v3  ;;  %v206_v9 = vld [vmem:[#allocation5 + $0x50] sm:$0xff]  ;;  %v1669_v10 = vand.u32 4294901760, %v208_v7  ;;  %v1671_v11 = vand.u32 4294901760, %v207_v8  ;;  %v205_v13 = vld [vmem:[#allocation5 + $0x48] sm:$0xff]  ;;  %v204_v14 = vld [vmem:[#allocation5 + $0x40] sm:$0xff]  ;;  %s2027_s24 = scalar_lea.hbm %s2071_s2, %s972_s17 }
  0x40   : > { %v1673_v12 = vand.u32 4294901760, %v206_v9  ;;  %1078 = vmatpush3.msra.mxu0 %v1663_v4  ;;  %v1677_v15 = vsub.f32 %v211_v1, %v1663_v4  ;;  %v1680_v16 = vsub.f32 %v210_v2, %v1665_v5  ;;  %v1682_v17 = vand.u32 4294901760, %v205_v13  ;;  %v203_v19 = vld [vmem:[#allocation5 + $0x38] sm:$0xff]  ;;  %v202_v26 = vld [vmem:[#allocation5 + $0x30] sm:$0xff]  ;;  %v201_v36 = vld [vmem:[#allocation5 + $0x28] sm:$0xff]  ;;  %s194_s19 = scalar_lea.vmem [#allocation7], %s968_s7 }
  0x41   : > { %v1685_v18 = vsub.f32 %v209_v3, %v1667_v6  ;;  %1079 = vmatprep.subr.mxu0 %v1508_v0  ;;  %v1689_v20 = vsub.f32 %v208_v7, %v1669_v10  ;;  %v1692_v21 = vsub.f32 %v207_v8, %v1671_v11  ;;  %v1698_v25 = vand.u32 4294901760, %v204_v14  ;;  %v200_v41 = vld [vmem:[#allocation5 + $0x20] sm:$0xff]  ;;  %v199_v49 = vld [vmem:[#allocation5 + $0x18] sm:$0xff]  ;;  %v198_v54 = vld [vmem:[#allocation5 + $0x10] sm:$0xff]  ;;  %s869_s21 = sshll.u32 %s194_s19, 4  ;;  %s855_s26 = scalar_lea.sflag [#allocation4], %s1641_s4  ;;  %s870_s21 = int_to_ptr.vmem [resolvable:$true] %s869_s21 }
  0x42   : > { %1080 = vmatpush3.msra.mxu0 %v1665_v5  ;;  %v306_v22 = vand.u32 4294901760, %v1677_v15  ;;  %v313_v23 = vand.u32 4294901760, %v1680_v16  ;;  %v1702_v28 = vand.u32 4294901760, %v203_v19  ;;  %v1706_v30 = vsub.f32 %v206_v9, %v1673_v12  ;;  %v195_v50 = vld [vmem:[%s1647_s16] sm:$0xff]  ;;  %v197_v60 = vld [vmem:[#allocation5 + $0x8] sm:$0xff]  ;;  %v196_v7 = vld [vmem:[#allocation5] sm:$0xff] }
  0x43   : > { %v320_v24 = vand.u32 4294901760, %v1685_v18  ;;  %1081 = vmatprep.subr.mxu0 %v1508_v0  ;;  %v327_v27 = vand.u32 4294901760, %v1689_v20  ;;  %v334_v29 = vand.u32 4294901760, %v1692_v21  ;;  %v1719_v34 = vsub.f32 %v205_v13, %v1682_v17  ;;  %s1418_s27 = scalar_lea.vmem %s870_s21, 128  ;;  %s1510_s12 = smov [#allocation7]  }
  0x44   : > { %1082 = vmatpush3.msra.mxu0 %v1667_v6  ;;  %v307_v31 = vsub.f32 %v1677_v15, %v306_v22  ;;  %v314_v32 = vsub.f32 %v1680_v16, %v313_v23  ;;  %v1722_v35 = vand.u32 4294901760, %v202_v26  ;;  %v341_v40 = vand.u32 4294901760, %v1706_v30  ;;  %p1419_p1 = scmp.ne.s32.totalorder %s870_s21, %s1418_s27  ;;  %s1422_s18 = sshll.u32 %s1510_s12, 4  ;;  %s1423_s18 = int_to_ptr.vmem [resolvable:$false] %s1422_s18 }
  0x45   : > { %v321_v33 = vsub.f32 %v1685_v18, %v320_v24  ;;  %1083 = vmatprep.subr.mxu0 %v1508_v0  ;;  %v328_v39 = vsub.f32 %v1689_v20, %v327_v27  ;;  %v335_v42 = vsub.f32 %v1692_v21, %v334_v29  ;;  %v1734_v43 = vsub.f32 %v204_v14, %v1698_v25  ;;  %s1424_s28 = scalar_lea.vmem %s1423_s18, 256  ;;  %p1425_p0 = scmp.lt.s32.totalorder %s870_s21, %s1423_s18 }
  0x46   : > { %1084 = vmatpush3.msra.mxu0 %v1669_v10  ;;  %v308_v37 = vand.u32 4294901760, %v307_v31  ;;  %v315_v38 = vand.u32 4294901760, %v314_v32  ;;  %v1737_v45 = vand.u32 4294901760, %v201_v36  ;;  %v348_v46 = vand.u32 4294901760, %v1719_v34  ;;  %p1420_p8 = pnand %p1419_p1, %p1613_p13  ;;  %p1426_p2 = scmp.lt.s32.totalorder %s1424_s28, %s1418_s27 }
  0x47   : > { %1085 = vmatprep.subr.mxu0 %v1508_v0  ;;  %v322_v44 = vand.u32 4294901760, %v321_v33  ;;  %v1741_v47 = vsub.f32 %v203_v19, %v1702_v28  ;;  %v1745_v48 = vand.u32 4294901760, %v200_v41  ;;  %v329_v51 = vand.u32 4294901760, %v328_v39 }
  0x48   : > { %1086 = vmatpush3.msra.mxu0 %v1671_v11  ;;  %1113 = vmatpush3.msra.mxu1 %v308_v37  ;;  %v342_v52 = vsub.f32 %v1706_v30, %v341_v40  ;;  %v355_v53 = vand.u32 4294901760, %v1734_v43  ;;  %v1754_v55 = vsub.f32 %v202_v26, %v1722_v35  ;;  %v336_v56 = vand.u32 4294901760, %v335_v42  ;;  %p1421_p10 = pneg %p1420_p8  ;;  %p1427_p3 = por %p1426_p2, %p1425_p0 }
  0x49   : > { %1087 = vmatprep.subr.mxu0 %v1508_v0  ;;  %1114 = vmatprep.subr.mxu1 %v1508_v0  ;;  %v362_v57 = vand.u32 4294901760, %v1741_v47  ;;  %v349_v58 = vsub.f32 %v1719_v34, %v348_v46  ;;  %v1763_v59 = vand.u32 4294901760, %v199_v49  ;;  %v1766_v61 = vsub.f32 %v201_v36, %v1737_v45 }
  0x4a   : > { %1088 = vmatpush3.msra.mxu0 %v1673_v12  ;;  %1115 = vmatpush3.msra.mxu1 %v315_v38  ;;  %v1768_v62 = vand.u32 4294901760, %v195_v50  ;;  %v1772_v63 = vand.u32 4294901760, %v198_v54  ;;  %v343_v1 = vand.u32 4294901760, %v342_v52  ;;  %v356_v2 = vsub.f32 %v1734_v43, %v355_v53  ;;  %p1428_p5 = pnand %p1427_p3, %p1421_p10 }
  0x4b   : > { %1089 = vmatprep.subr.mxu0 %v1508_v0  ;;  %1116 = vmatprep.subr.mxu1 %v1508_v0  ;;  %v369_v3 = vand.u32 4294901760, %v1754_v55  ;;  %v1780_v8 = vsub.f32 %v200_v41, %v1745_v48  ;;  %v363_v9 = vsub.f32 %v1741_v47, %v362_v57  ;;  %v1787_v13 = vand.u32 4294901760, %v197_v60 }
  0x4c   : > { %1090 = vmatpush3.msra.mxu0 %v1682_v17  ;;  %1117 = vmatpush3.msra.mxu1 %v322_v44  ;;  %v350_v14 = vand.u32 4294901760, %v349_v58  ;;  %v376_v19 = vand.u32 4294901760, %v1766_v61  ;;  %v1792_v26 = vsub.f32 %v195_v50, %v1768_v62  ;;  %v1795_v31 = vsub.f32 %v199_v49, %v1763_v59 }
  0x4d   : > { %1091 = vmatprep.subr.mxu0 %v1508_v0  ;;  %1118 = vmatprep.subr.mxu1 %v1508_v0  ;;  %v1799_v32 = vand.u32 4294901760, %v196_v7  ;;  %v357_v33 = vand.u32 4294901760, %v356_v2  ;;  %v370_v36 = vsub.f32 %v1754_v55, %v369_v3  ;;  %v383_v37 = vand.u32 4294901760, %v1780_v8 }
  0x4e   : > { %1092 = vmatpush3.msra.mxu0 %v1698_v25  ;;  %1119 = vmatpush3.msra.mxu1 %v329_v51  ;;  %v1807_v38 = vsub.f32 %v198_v54, %v1772_v63  ;;  %v364_v39 = vand.u32 4294901760, %v363_v9  ;;  %v377_v41 = vsub.f32 %v1766_v61, %v376_v19  ;;  %v295_v42 = vand.u32 4294901760, %v1792_v26 }
  0x4f   : > { %1093 = vmatprep.subr.mxu0 %v1508_v0  ;;  %1120 = vmatprep.subr.mxu1 %v1508_v0  ;;  %v390_v44 = vand.u32 4294901760, %v1795_v31  ;;  %v1818_v49 = vsub.f32 %v197_v60, %v1787_v13  ;;  %v371_v50 = vand.u32 4294901760, %v370_v36  ;;  %v384_v51 = vsub.f32 %v1780_v8, %v383_v37 }
  0x50   : > { %1094 = vmatpush3.msra.mxu0 %v1702_v28  ;;  %1121 = vmatpush3.msra.mxu1 %v336_v56  ;;  %v397_v52 = vand.u32 4294901760, %v1807_v38  ;;  %v1828_v54 = vsub.f32 %v196_v7, %v1799_v32  ;;  %v378_v56 = vand.u32 4294901760, %v377_v41  ;;  %v296_v58 = vsub.f32 %v1792_v26, %v295_v42 }
  0x51   : > { %1095 = vmatprep.subr.mxu0 %v1508_v0  ;;  %1122 = vmatprep.subr.mxu1 %v1508_v0  ;;  %v391_v60 = vsub.f32 %v1795_v31, %v390_v44  ;;  %v385_v2 = vand.u32 4294901760, %v384_v51 }
  0x52   : > { %1096 = vmatpush3.msra.mxu0 %v1722_v35  ;;  %1123 = vmatpush3.msra.mxu1 %v343_v1  ;;  %v404_v1 = vand.u32 4294901760, %v1818_v49  ;;  %v398_v7 = vsub.f32 %v1807_v38, %v397_v52  ;;  %v411_v9 = vand.u32 4294901760, %v1828_v54 }
  0x53   : > { %1097 = vmatprep.subr.mxu0 %v1508_v0  ;;  %1124 = vmatprep.subr.mxu1 %v1508_v0 }
  0x54   : > { %1098 = vmatpush3.msra.mxu0 %v1737_v45  ;;  %1125 = vmatpush3.msra.mxu1 %v350_v14  ;;  %v297_v14 = vand.u32 4294901760, %v296_v58  ;;  %v405_v36 = vsub.f32 %v1818_v49, %v404_v1  ;;  %v412_v41 = vsub.f32 %v1828_v54, %v411_v9 }
  0x55   : > { %1099 = vmatprep.subr.mxu0 %v1508_v0  ;;  %1126 = vmatprep.subr.mxu1 %v1508_v0 }
  0x56   : > { %1100 = vmatpush3.msra.mxu0 %v1745_v48  ;;  %1127 = vmatpush3.msra.mxu1 %v357_v33  ;;  %v392_v33 = vand.u32 4294901760, %v391_v60  ;;  %v413_v51 = vand.u32 4294901760, %v412_v41 }
  0x57   : > { %1101 = vmatprep.subr.mxu0 %v1508_v0  ;;  %1128 = vmatprep.subr.mxu1 %v1508_v0 }
  0x58   : > { %1102 = vmatpush3.msra.mxu0 %v1763_v59  ;;  %1129 = vmatpush3.msra.mxu1 %v364_v39  ;;  %v399_v39 = vand.u32 4294901760, %v398_v7 }
  0x59   : > { %1103 = vmatprep.subr.mxu0 %v1508_v0  ;;  %1130 = vmatprep.subr.mxu1 %v1508_v0 }
  0x5a   : > { %1104 = vmatpush3.msra.mxu0 %v1772_v63  ;;  %1131 = vmatpush3.msra.mxu1 %v371_v50  ;;  %v406_v50 = vand.u32 4294901760, %v405_v36 }
  0x5b   : > { %1105 = vmatprep.subr.mxu0 %v1508_v0  ;;  %1132 = vmatprep.subr.mxu1 %v1508_v0 }
  0x5c   : > { %1106 = vmatpush3.msra.mxu0 %v1787_v13  ;;  %1133 = vmatpush3.msra.mxu1 %v378_v56 }
  0x5d   : > { %1107 = vmatprep.subr.mxu0 %v1508_v0  ;;  %1134 = vmatprep.subr.mxu1 %v1508_v0 }
  0x5e   : > { %1108 = vmatpush3.msra.mxu0 %v1799_v32  ;;  %1135 = vmatpush3.msra.mxu1 %v385_v2 }
  0x5f   : > { %1136 = vmatprep.subr.mxu1 %v1508_v0  ;;  %1147 = vmatprep.subr.mxu0 %v1508_v0 }
  0x60   : > { %1110 = vmatmul.mubr.f32.vlgmr.msra.gmra.mxu0 %v297_v14  ;;  %1137 = vmatpush3.msra.mxu1 %v392_v33 }
  0x61   : > { %1148 = vmatpush3.msra.mxu0 %v1677_v15  ;;  %1138 = vmatprep.subr.mxu1 %v1508_v0 }
  0x62   : > { %1149 = vmatprep.subr.mxu0 %v1508_v0  ;;  %1139 = vmatpush3.msra.mxu1 %v399_v39 }
  0x63   : > { %1150 = vmatpush3.msra.mxu0 %v1680_v16  ;;  %1140 = vmatprep.subr.mxu1 %v1508_v0 }
  0x64   : > { %1151 = vmatprep.subr.mxu0 %v1508_v0  ;;  %1141 = vmatpush3.msra.mxu1 %v406_v50 }
  0x65   : > { %1152 = vmatpush3.msra.mxu0 %v1685_v18  ;;  %1142 = vmatprep.subr.mxu1 %v1508_v0 }
  0x66   : > { %1153 = vmatprep.subr.mxu0 %v1508_v0  ;;  %1143 = vmatpush3.msra.mxu1 %v413_v51 }
  0x67   : > { %1154 = vmatpush3.msra.mxu0 %v1689_v20  ;;  %1145 = vmatmul.mubr.f32.vlgmr.msra.gmra.mxu1 %v1768_v62 }
  0x68   : > { %1155 = vmatprep.subr.mxu0 %v1508_v0  ;;  %1182 = vmatprep.subr.mxu1 %v1508_v0 }
  0x69   : > { %1156 = vmatpush3.msra.mxu0 %v1692_v21  ;;  %1183 = vmatpush3.msra.mxu1 %v1663_v4 }
  0x6a   : > { %1157 = vmatprep.subr.mxu0 %v1508_v0  ;;  %1184 = vmatprep.subr.mxu1 %v1508_v0 }
  0x6b   : > { %1158 = vmatpush3.msra.mxu0 %v1706_v30  ;;  %1185 = vmatpush3.msra.mxu1 %v1665_v5 }
  0x6c   : > { %1159 = vmatprep.subr.mxu0 %v1508_v0  ;;  %1186 = vmatprep.subr.mxu1 %v1508_v0 }
  0x6d   : > { %1160 = vmatpush3.msra.mxu0 %v1719_v34  ;;  %1187 = vmatpush3.msra.mxu1 %v1667_v6 }
  0x6e   : > { %1161 = vmatprep.subr.mxu0 %v1508_v0  ;;  %1188 = vmatprep.subr.mxu1 %v1508_v0 }
  0x6f   : > { %1162 = vmatpush3.msra.mxu0 %v1734_v43  ;;  %1189 = vmatpush3.msra.mxu1 %v1669_v10 }
  0x70   : > { %1163 = vmatprep.subr.mxu0 %v1508_v0  ;;  %1190 = vmatprep.subr.mxu1 %v1508_v0 }
  0x71   : > { %1164 = vmatpush3.msra.mxu0 %v1741_v47  ;;  %1191 = vmatpush3.msra.mxu1 %v1671_v11 }
  0x72   : > { %1165 = vmatprep.subr.mxu0 %v1508_v0  ;;  %1192 = vmatprep.subr.mxu1 %v1508_v0 }
  0x73   : > { %1166 = vmatpush3.msra.mxu0 %v1754_v55  ;;  %1193 = vmatpush3.msra.mxu1 %v1673_v12 }
  0x74   : > { %1167 = vmatprep.subr.mxu0 %v1508_v0  ;;  %1194 = vmatprep.subr.mxu1 %v1508_v0 }
  0x75   : > { %1168 = vmatpush3.msra.mxu0 %v1766_v61  ;;  %1195 = vmatpush3.msra.mxu1 %v1682_v17 }
  0x76   : > { %1169 = vmatprep.subr.mxu0 %v1508_v0  ;;  %1196 = vmatprep.subr.mxu1 %v1508_v0 }
  0x77   : > { %1170 = vmatpush3.msra.mxu0 %v1780_v8  ;;  %1197 = vmatpush3.msra.mxu1 %v1698_v25 }
  0x78   : > { %1171 = vmatprep.subr.mxu0 %v1508_v0  ;;  %1198 = vmatprep.subr.mxu1 %v1508_v0 }
  0x79   : > { %1172 = vmatpush3.msra.mxu0 %v1795_v31  ;;  %1199 = vmatpush3.msra.mxu1 %v1702_v28 }
  0x7a   : > { %1173 = vmatprep.subr.mxu0 %v1508_v0  ;;  %1200 = vmatprep.subr.mxu1 %v1508_v0 }
  0x7b   : > { %1174 = vmatpush3.msra.mxu0 %v1807_v38  ;;  %1201 = vmatpush3.msra.mxu1 %v1722_v35 }
  0x7c   : > { %1175 = vmatprep.subr.mxu0 %v1508_v0  ;;  %1202 = vmatprep.subr.mxu1 %v1508_v0 }
  0x7d   : > { %1176 = vmatpush3.msra.mxu0 %v1818_v49  ;;  %1203 = vmatpush3.msra.mxu1 %v1737_v45 }
  0x7e   : > { %1177 = vmatprep.subr.mxu0 %v1508_v0  ;;  %1204 = vmatprep.subr.mxu1 %v1508_v0 }
  0x7f   : > { %1178 = vmatpush3.msra.mxu0 %v1828_v54  ;;  %1179 = vmatprep.mubr.msk.f32.mxu0 %vm1509_vm0, %v1508_v0 }
  0x80   : > { %1205 = vmatpush3.msra.mxu1 %v1745_v48  ;;  %1180 = vmatmul.mubr.f32.vlgmr.msra.gmra.mxu0 %v1792_v26 }
  0x81   : > { %1206 = vmatprep.subr.mxu1 %v1508_v0  ;;  %1217 = vmatprep.subr.mxu0 %v1508_v0 }
  0x82   : > { %1207 = vmatpush3.msra.mxu1 %v1763_v59  ;;  %1218 = vmatpush3.msra.mxu0 %v306_v22 }
  0x83   : > { %1208 = vmatprep.subr.mxu1 %v1508_v0  ;;  %1219 = vmatprep.subr.mxu0 %v1508_v0 }
  0x84   : > { %1209 = vmatpush3.msra.mxu1 %v1772_v63  ;;  %1220 = vmatpush3.msra.mxu0 %v313_v23 }
  0x85   : > { %1210 = vmatprep.subr.mxu1 %v1508_v0  ;;  %1221 = vmatprep.subr.mxu0 %v1508_v0 }
  0x86   : > { %1211 = vmatpush3.msra.mxu1 %v1787_v13  ;;  %1222 = vmatpush3.msra.mxu0 %v320_v24 }
  0x87   : > { %1212 = vmatprep.subr.mxu1 %v1508_v0  ;;  %1223 = vmatprep.subr.mxu0 %v1508_v0 }
  0x88   : > { %1213 = vmatpush3.msra.mxu1 %v1799_v32  ;;  %1214 = vmatprep.mubr.msk.f32.mxu1 %vm1509_vm0, %v1508_v0 }
  0x89   : > { %1224 = vmatpush3.msra.mxu0 %v327_v27  ;;  %1215 = vmatmul.mubr.f32.vlgmr.msra.gmra.mxu1 %v295_v42 }
  0x8a   : > { %1225 = vmatprep.subr.mxu0 %v1508_v0  ;;  %1252 = vmatprep.subr.mxu1 %v1508_v0 }
  0x8b   : > { %1226 = vmatpush3.msra.mxu0 %v334_v29  ;;  %1253 = vmatpush3.msra.mxu1 %v1663_v4 }
  0x8c   : > { %1227 = vmatprep.subr.mxu0 %v1508_v0  ;;  %1254 = vmatprep.subr.mxu1 %v1508_v0 }
  0x8d   : > { %1228 = vmatpush3.msra.mxu0 %v341_v40  ;;  %1255 = vmatpush3.msra.mxu1 %v1665_v5 }
  0x8e   : > { %1229 = vmatprep.subr.mxu0 %v1508_v0  ;;  %1256 = vmatprep.subr.mxu1 %v1508_v0 }
  0x8f   : > { %1230 = vmatpush3.msra.mxu0 %v348_v46  ;;  %1257 = vmatpush3.msra.mxu1 %v1667_v6 }
  0x90   : > { %1231 = vmatprep.subr.mxu0 %v1508_v0  ;;  %1258 = vmatprep.subr.mxu1 %v1508_v0 }
  0x91   : > { %1232 = vmatpush3.msra.mxu0 %v355_v53  ;;  %1259 = vmatpush3.msra.mxu1 %v1669_v10 }
  0x92   : > { %1233 = vmatprep.subr.mxu0 %v1508_v0  ;;  %1260 = vmatprep.subr.mxu1 %v1508_v0 }
  0x93   : > { %1234 = vmatpush3.msra.mxu0 %v362_v57  ;;  %1261 = vmatpush3.msra.mxu1 %v1671_v11 }
  0x94   : > { %1235 = vmatprep.subr.mxu0 %v1508_v0  ;;  %1262 = vmatprep.subr.mxu1 %v1508_v0 }
  0x95   : > { %1236 = vmatpush3.msra.mxu0 %v369_v3  ;;  %1263 = vmatpush3.msra.mxu1 %v1673_v12 }
  0x96   : > { %1237 = vmatprep.subr.mxu0 %v1508_v0  ;;  %1264 = vmatprep.subr.mxu1 %v1508_v0 }
  0x97   : > { %1238 = vmatpush3.msra.mxu0 %v376_v19  ;;  %1265 = vmatpush3.msra.mxu1 %v1682_v17 }
  0x98   : > { %1239 = vmatprep.subr.mxu0 %v1508_v0  ;;  %1266 = vmatprep.subr.mxu1 %v1508_v0 }
  0x99   : > { %1240 = vmatpush3.msra.mxu0 %v383_v37  ;;  %1267 = vmatpush3.msra.mxu1 %v1698_v25 }
  0x9a   : > { %1241 = vmatprep.subr.mxu0 %v1508_v0  ;;  %1268 = vmatprep.subr.mxu1 %v1508_v0 }
  0x9b   : > { %1242 = vmatpush3.msra.mxu0 %v390_v44  ;;  %1269 = vmatpush3.msra.mxu1 %v1702_v28 }
  0x9c   : > { %1243 = vmatprep.subr.mxu0 %v1508_v0  ;;  %1270 = vmatprep.subr.mxu1 %v1508_v0 }
  0x9d   : > { %1244 = vmatpush3.msra.mxu0 %v397_v52  ;;  %1271 = vmatpush3.msra.mxu1 %v1722_v35 }
  0x9e   : > { %1245 = vmatprep.subr.mxu0 %v1508_v0  ;;  %1272 = vmatprep.subr.mxu1 %v1508_v0 }
  0x9f   : > { %1246 = vmatpush3.msra.mxu0 %v404_v1  ;;  %1273 = vmatpush3.msra.mxu1 %v1737_v45 }
  0xa0   : > { %1247 = vmatprep.subr.mxu0 %v1508_v0  ;;  %1274 = vmatprep.subr.mxu1 %v1508_v0 }
  0xa1   : > { %1248 = vmatpush3.msra.mxu0 %v411_v9  ;;  %1249 = vmatprep.mubr.msk.f32.mxu0 %vm1509_vm0, %v1508_v0 }
  0xa2   : > { %1275 = vmatpush3.msra.mxu1 %v1745_v48  ;;  %1250 = vmatmul.mubr.f32.vlgmr.msra.gmra.mxu0 %v1768_v62 }
  0xa3   : > { %1276 = vmatprep.subr.mxu1 %v1508_v0  ;;  %1284 = vmatprep.mubr.msk.f32.mxu1 %vm1509_vm0, %v1508_v0 }
  0xa4   : > { %1277 = vmatpush3.msra.mxu1 %v1763_v59 }
  0xa5   : > { %1278 = vmatprep.subr.mxu1 %v1508_v0 }
  0xa6   : > { %1279 = vmatpush3.msra.mxu1 %v1772_v63 }
  0xa7   : > { %1280 = vmatprep.subr.mxu1 %v1508_v0 }
  0xa8   : > { %1281 = vmatpush3.msra.mxu1 %v1787_v13 }
  0xa9   : > { %1282 = vmatprep.subr.mxu1 %v1508_v0 }
  0xaa   : > { %1283 = vmatpush3.msra.mxu1 %v1799_v32 }
  0xab   : > { %1285 = vmatmul.mubr.f32.vlgmr.msra.gmra.mxu1 %v1768_v62 }
 0x120   : > { %v299_v4 = vpop.f32.mrf.mxu0 }
 0x122   : > { %v1111_v5 = vpop.f32.mrf.mxu0 }
 0x127   : > { %v450_v6 = vpop.f32.mrf.mxu1 }
 0x128   : > { %v451_v18 = vadd.f32 %v450_v6, %v299_v4 }
 0x129   : > { %v1146_v10 = vpop.f32.mrf.mxu1 }
 0x140   : > { %v554_v11 = vpop.f32.mrf.mxu0 }
 0x141   : > { %v555_v0 = vadd.f32 %v554_v11, %v451_v18 }
 0x142   : > { %v1181_v12 = vpop.f32.mrf.mxu0 }
 0x149   : > { %v643_v15 = vpop.f32.mrf.mxu1 }
 0x14a   : > { %v644_v21 = vadd.f32 %v643_v15, %v555_v0 }
 0x14b   : > { %v1216_v16 = vpop.f32.mrf.mxu1 }
 0x162   : > { %v762_v17 = vpop.f32.mrf.mxu0 }
 0x163   : > { %v763_v22 = vadd.f32 %v762_v17, %v644_v21 }
 0x164   : > { %v1251_v20 = vpop.f32.mrf.mxu0 }
 0x16b   : > { %v849_v23 = vpop.f32.mrf.mxu1 }
 0x16c   : > { %v850_v24 = vadd.f32 %v849_v23, %v763_v22 }
 0x16d   : > { %v1286_v25 = vpop.f32.mrf.mxu1 }
 0x16e   : > { %853 = vst [vmem:[%s194_s19] sm:$0xff] %v850_v24 }
 0x16f   : > { %1431 = shalt.err (!%p1428_p5)
}
 0x170   : > { %s1432_s29 = scalar_lea.hbm %s2027_s24, 128  ;;  %s1436_s6 = scalar_lea.hbm %s2071_s2, 256 }
 0x171   : > { %p1433_p7 = scmp.ne.s32.totalorder %s2027_s24, %s1432_s29  ;;  %p1437_p9 = scmp.lt.s32.totalorder %s2027_s24, %s2071_s2 }
 0x172   : > { %p1438_p11 = scmp.lt.s32.totalorder %s1436_s6, %s1432_s29 }
 0x173   : > { %p1434_p6 = pnand %p1433_p7, %p1613_p13 }
 0x174   : > { %p1439_p12 = por %p1438_p11, %p1437_p9 }
 0x175   : > { %p1435_p4 = pneg %p1434_p6 }
 0x177   : > { %p1440_p1 = pnand %p1439_p12, %p1435_p4 }
 0x179   : > { %1443 = shalt.err (!%p1440_p1)
}
 0x17a   : > { %1293 = dma.vmem_to_hbm [thread:$0]  (%p1613_p13), %s870_s21, 128, %s2027_s24, %s855_s26  }
 0x17b PF: > { %s881_s8 = sand.u32 1, %s1482_s9   ;;  %p2083_p8 = scmp.ne.s32.totalorder %s2076_s20, 0 }
 0x17c   : > { %p2084_p10 = scmp.ge.s32.totalorder %s1502_s14, 2  ;;  %s882_s16 = scalar_lea.sflag [#allocation4], %s881_s8 }
 0x17e   : > { %p1304_p0 = pnand %p2084_p10, %p2083_p8 }
 0x180   : > { %p1305_p2 = pneg %p1304_p0 }
 0x182   : > { %1477 = dma.done.wait (%p1305_p2), %s882_s16, 128  }
 0x183   : > { %1479 = vsyncadd (%p1305_p2), %s882_s16, 4294967168  ;;  %s19_s14 = sadd.s32 1, %s1502_s14   ;;  %s2085_s9 = smov %s1486_s10 }
 0x184   : > { %p16_p3 = scmp.ge.s32.totalorder %s19_s14, 4   ;;  %s2086_s10 = smov %s1490_s11 }
 0x185   : > { %s2087_s11 = smov %s1622_s15  ;;  %s2088_s12 = smov %s1498_s13 }
 0x186   : > { %s2089_s13 = smov %s2091_s25  ;;  %18 = sbr.rel (!%p16_p3) target bundleno = 7 (0x7), region = 78 }
 0x18b   :  { %887 = vsyncpa [#allocation3], 1 }
 0x18c   :  { %889 = vsyncpa [#allocation3 + $0x1], 1 }
 0x18d   :  { %890 = vsyncpa [#allocation6], 1 }
 0x18e   :  { %891 = vsyncpa [#allocation4], 1 }
 0x18f   :  { %893 = vsyncpa [#allocation4 + $0x1], 1 }

</bundles_post_ra>
